<compile_context>
chip_gen: v7x
topology: tpu7x:2x2x1
jax: 0.10.0
libtpu: 0.0.40
codegen_flags: <defaults>
</compile_context>

<pallas_src>
import functools

import jax
import jax.numpy as jnp
from jax.experimental import pallas as pl
from jax.experimental.pallas import tpu as pltpu

_LANE = 128


def _round_up(x, m):
    return ((x + m - 1) // m) * m


# ----------------------------------------------------------------------------
# Pallas kernel: per-tile partial sums
# ----------------------------------------------------------------------------
def _loss_kernel(pred_ref, target_ref, out_ref, *, w0, w1, w2, alpha):
    """pred/target: (6, Tb) channel-major tiles (batch on lanes).

    out_ref: (1, 4) = [weighted block-focal sum, ball-focal sum,
                       ball-gated position squared-error sum, ball count].
    Padded lanes hold zeros and contribute exactly 0 to every sum.
    """
    p = pred_ref[...]                                  # (6, Tb) f32
    t = target_ref[...]

    eps = jnp.float32(1e-8)
    # Single-log BCE: bit-exact vs. -(t*log(p+eps) + (1-t)*log(1-p+eps)) for
    # exact 0/1 targets (rows 0-2 and 5).  Rows 3-4 have continuous targets so
    # their focal value differs from the two-log form, but those rows are
    # never read below — do NOT "fix" this back to the two-log form.
    is_one = t == 1.0
    pt = jnp.where(is_one, p, 1.0 - p)
    bce = -jnp.log(pt + eps)
    omp = 1.0 - pt                                     # gamma == 2.0 (module default)
    alpha_w = jnp.where(is_one, jnp.float32(alpha), jnp.float32(1.0 - alpha))
    fl = (omp * omp) * (alpha_w * bce)                 # (6, Tb)

    # Lane (batch) reduction first: (6, Tb) -> (6, 1).
    fl_rows = jnp.sum(fl, axis=1, keepdims=True)

    # Block focal partial sum; per-row weights folded in as immediates.
    s_block = (w0 * fl_rows[0:1, :] + w1 * fl_rows[1:2, :]
               + w2 * fl_rows[2:3, :]) * jnp.float32(1.0 / 3.0)     # (1, 1)
    s_ball = fl_rows[5:6, :]                                        # (1, 1)

    # Ball-gated position MSE partials (rows 3:5, gated by target row 5).
    ball_exists = t[5:6, :]                                         # (1, Tb)
    diff = p[3:5, :] - t[3:5, :]                                    # (2, Tb)
    wsq = diff * diff * ball_exists                                 # (2, Tb)
    s_pos = jnp.sum(jnp.sum(wsq, axis=1, keepdims=True),
                    axis=0, keepdims=True)                          # (1, 1)
    s_nball = jnp.sum(ball_exists, axis=1, keepdims=True)           # (1, 1)

    # Pack the four partial sums into one lane-packed (1, 4) store
    # (single store + writeback DMA instead of four masked ones).
    lane = jax.lax.broadcasted_iota(jnp.int32, (1, 4), 1)
    zero = jnp.float32(0.0)
    out_ref[...] = (jnp.where(lane == 0, s_block, zero)
                    + jnp.where(lane == 1, s_ball, zero)
                    + jnp.where(lane == 2, s_pos, zero)
                    + jnp.where(lane == 3, s_nball, zero))


# ----------------------------------------------------------------------------
# Wrapper
# ----------------------------------------------------------------------------
def rebalanced_red_ball_loss(pred, target, *,
                             block_weight=10.0, position_weight=1.0,
                             ball_exists_weight=1.0,
                             block_pos_weight=(4.0, 4.0, 4.0),
                             gamma=2.0, alpha=0.25,
                             max_tile_lanes=8192):
    """Returns (total_loss, metrics_dict) matching RebalancedRedBallLoss.forward.

    metrics values are JAX scalars (PyTorch returned .item() host floats).
    """
    # TODO(synk): PyTorch's .item() host-float extraction has no in-graph
    # equivalent; metrics are returned as JAX scalars instead.
    pred = jnp.asarray(pred, jnp.float32)
    target = jnp.asarray(target, jnp.float32)
    B, D = pred.shape
    assert D == 6 and target.shape == (B, 6), (pred.shape, target.shape)
    assert float(gamma) == 2.0, "kernel hardcodes the module default gamma=2.0"

    # Channel-major layout: batch on the 128-wide lane axis, padded with zeros
    # (zero-padded lanes contribute exactly 0 to every partial sum).
    tile_b = min(_round_up(B, _LANE), max_tile_lanes)       # multiple of 128
    padded_b = _round_up(B, tile_b)
    grid_n = padded_b // tile_b

    pred_t = pred.T                                          # (6, B)
    target_t = target.T
    if padded_b != B:
        pad = ((0, 0), (0, padded_b - B))
        pred_t = jnp.pad(pred_t, pad)
        target_t = jnp.pad(target_t, pad)

    kernel = functools.partial(
        _loss_kernel,
        w0=float(block_pos_weight[0]),
        w1=float(block_pos_weight[1]),
        w2=float(block_pos_weight[2]),
        alpha=float(alpha))

    parts = pl.pallas_call(
        kernel,
        out_shape=jax.ShapeDtypeStruct((grid_n, 1, 4), jnp.float32),
        grid=(grid_n,),
        in_specs=[pl.BlockSpec((6, tile_b), lambda i: (0, i)),
                  pl.BlockSpec((6, tile_b), lambda i: (0, i))],
        out_specs=pl.BlockSpec((None, 1, 4), lambda i: (i, 0, 0)),
        compiler_params=pltpu.CompilerParams(
            dimension_semantics=("parallel",)),
    )(pred_t, target_t)

    # Final combine / normalization: tiny scalar math, done in XLA.
    sums = jnp.sum(parts.reshape(grid_n, 4), axis=0)         # (4,)
    inv_b = jnp.float32(1.0 / B)
    block_loss = sums[0] * inv_b
    ball_loss = sums[1] * inv_b
    pos_loss = sums[2] / (sums[3] + 1e-6)
    total = (block_weight * block_loss
             + position_weight * pos_loss
             + ball_exists_weight * ball_loss)

    metrics = {
        "block_loss": block_loss,
        "position_loss": pos_loss,
        "ball_exists_loss": ball_loss,
        "total_loss": total,
    }
    return total, metrics


# ----------------------------------------------------------------------------
# Pure-JAX reference (mirrors the PyTorch module) for a correctness check
# ----------------------------------------------------------------------------
def _reference_loss(pred, target, block_weight=10.0, position_weight=1.0,
                    ball_exists_weight=1.0, block_pos_weight=(4.0, 4.0, 4.0),
                    gamma=2.0, alpha=0.25):
    def focal(p, t):
        bce = -(t * jnp.log(p + 1e-8) + (1.0 - t) * jnp.log(1.0 - p + 1e-8))
        pt = jnp.where(t == 1.0, p, 1.0 - p)
        return jnp.mean(((1.0 - pt) ** gamma)
                        * jnp.where(t == 1.0, alpha, 1.0 - alpha) * bce)

    block_loss = sum(focal(pred[:, i], target[:, i]) * block_pos_weight[i]
                     for i in range(3)) / 3.0
    ball_loss = focal(pred[:, 5], target[:, 5])
    ball_exists = target[:, 5:6]
    pos_losses = (pred[:, 3:5] - target[:, 3:5]) ** 2
    num_balls = jnp.sum(ball_exists) + 1e-6
    pos_loss = jnp.sum(pos_losses * ball_exists) / num_balls
    total = (block_weight * block_loss + position_weight * pos_loss
             + ball_exists_weight * ball_loss)
    return total, block_loss, pos_loss, ball_loss


if __name__ == "__main__":
    key = jax.random.PRNGKey(0)
    kp, kt1, kt2, kt3 = jax.random.split(key, 4)
    B = 2

    # Predictions shaped like the detector head output:
    #   cols 0-2 and 5 are sigmoid probabilities, cols 3-4 are xy positions.
    raw = jax.random.normal(kp, (B, 6), jnp.float32)
    pred = jnp.concatenate(
        [jax.nn.sigmoid(raw[:, 0:3]),
         raw[:, 3:5] * 0.1 + 0.5,
         jax.nn.sigmoid(raw[:, 5:6])], axis=1)

    block_t = (jax.random.uniform(kt1, (B, 3)) > 0.5).astype(jnp.float32)
    pos_t = jax.random.uniform(kt2, (B, 2), jnp.float32)
    ball_t = (jax.random.uniform(kt3, (B, 1)) > 0.3).astype(jnp.float32)
    target = jnp.concatenate([block_t, pos_t, ball_t], axis=1)

    total, metrics = jax.jit(rebalanced_red_ball_loss)(pred, target)
    total = jax.block_until_ready(total)

    ref_total, ref_block, ref_pos, ref_ball = _reference_loss(pred, target)
    assert jnp.allclose(total, ref_total, rtol=1e-5, atol=1e-5), (total, ref_total)
    assert jnp.allclose(metrics["block_loss"], ref_block, rtol=1e-5, atol=1e-5)
    assert jnp.allclose(metrics["position_loss"], ref_pos, rtol=1e-5, atol=1e-5)
    assert jnp.allclose(metrics["ball_exists_loss"], ref_ball, rtol=1e-5, atol=1e-5)
    assert bool(jnp.isfinite(total))
    print("KERNEL_OK")
</pallas_src>

<mosaic_0001>
module attributes {stable_mosaic.version = 11 : i64} {
  func.func @_loss_kernel(%arg0: i32, %arg1: memref<6x128xf32, #tpu.memory_space<vmem>>, %arg2: memref<6x128xf32, #tpu.memory_space<vmem>>, %arg3: memref<1x1x4xf32, #tpu.memory_space<vmem>>) attributes {dimension_semantics = [#tpu.dimension_semantics<parallel>], iteration_bounds = array<i64: 1>, scalar_prefetch = 0 : i64, scratch_operands = 0 : i64, tpu.core_type = #tpu.core_type<tc>, window_params = [{transform_indices = @transform_0, window_bounds = array<i64: 6, 128>}, {transform_indices = @transform_1, window_bounds = array<i64: 6, 128>}, {transform_indices = @transform_2, window_bounds = array<i64: 1, 1, 4>}]} {
    %c0 = arith.constant 0 : index
    %c0_0 = arith.constant 0 : index
    %0 = vector.load %arg1[%c0, %c0_0] : memref<6x128xf32, #tpu.memory_space<vmem>>, vector<6x128xf32>
    %c0_1 = arith.constant 0 : index
    %c0_2 = arith.constant 0 : index
    %1 = vector.load %arg2[%c0_1, %c0_2] : memref<6x128xf32, #tpu.memory_space<vmem>>, vector<6x128xf32>
    %cst = arith.constant 1.000000e+00 : f32
    %2 = vector.broadcast %cst : f32 to vector<6x128xf32>
    %3 = arith.cmpf oeq, %1, %2 : vector<6x128xf32>
    %cst_3 = arith.constant 1.000000e+00 : f32
    %4 = vector.broadcast %cst_3 : f32 to vector<6x128xf32>
    %5 = arith.subf %4, %0 : vector<6x128xf32>
    %6 = arith.select %3, %0, %5 : vector<6x128xi1>, vector<6x128xf32>
    %cst_4 = arith.constant 9.99999993E-9 : f32
    %7 = vector.broadcast %cst_4 : f32 to vector<6x128xf32>
    %8 = arith.addf %6, %7 : vector<6x128xf32>
    %9 = math.log %8 : vector<6x128xf32>
    %cst_5 = arith.constant 0.000000e+00 : f32
    %10 = vector.broadcast %cst_5 : f32 to vector<6x128xf32>
    %11 = arith.subf %10, %9 : vector<6x128xf32>
    %cst_6 = arith.constant 1.000000e+00 : f32
    %12 = vector.broadcast %cst_6 : f32 to vector<6x128xf32>
    %13 = arith.subf %12, %6 : vector<6x128xf32>
    %cst_7 = arith.constant 2.500000e-01 : f32
    %cst_8 = arith.constant 7.500000e-01 : f32
    %14 = vector.broadcast %cst_7 : f32 to vector<6x128xf32>
    %15 = vector.broadcast %cst_8 : f32 to vector<6x128xf32>
    %16 = arith.select %3, %14, %15 : vector<6x128xi1>, vector<6x128xf32>
    %17 = arith.mulf %13, %13 : vector<6x128xf32>
    %18 = arith.mulf %16, %11 : vector<6x128xf32>
    %19 = arith.mulf %17, %18 : vector<6x128xf32>
    %cst_9 = arith.constant dense<0.000000e+00> : vector<6xf32>
    %20 = vector.multi_reduction <add>, %19, %cst_9 [1] : vector<6x128xf32> to vector<6xf32>
    %21 = vector.shape_cast %20 : vector<6xf32> to vector<6x1xf32>
    %22 = vector.extract_strided_slice %21 {offsets = [0, 0], sizes = [1, 1], strides = [1, 1]} : vector<6x1xf32> to vector<1x1xf32>
    %cst_10 = arith.constant 4.000000e+00 : f32
    %23 = vector.broadcast %cst_10 : f32 to vector<1x1xf32>
    %24 = arith.mulf %23, %22 : vector<1x1xf32>
    %25 = vector.extract_strided_slice %21 {offsets = [1, 0], sizes = [1, 1], strides = [1, 1]} : vector<6x1xf32> to vector<1x1xf32>
    %cst_11 = arith.constant 4.000000e+00 : f32
    %26 = vector.broadcast %cst_11 : f32 to vector<1x1xf32>
    %27 = arith.mulf %26, %25 : vector<1x1xf32>
    %28 = arith.addf %24, %27 : vector<1x1xf32>
    %29 = vector.extract_strided_slice %21 {offsets = [2, 0], sizes = [1, 1], strides = [1, 1]} : vector<6x1xf32> to vector<1x1xf32>
    %cst_12 = arith.constant 4.000000e+00 : f32
    %30 = vector.broadcast %cst_12 : f32 to vector<1x1xf32>
    %31 = arith.mulf %30, %29 : vector<1x1xf32>
    %32 = arith.addf %28, %31 : vector<1x1xf32>
    %cst_13 = arith.constant 0.333333343 : f32
    %33 = vector.broadcast %cst_13 : f32 to vector<1x1xf32>
    %34 = arith.mulf %32, %33 : vector<1x1xf32>
    %35 = vector.extract_strided_slice %21 {offsets = [5, 0], sizes = [1, 1], strides = [1, 1]} : vector<6x1xf32> to vector<1x1xf32>
    %36 = vector.extract_strided_slice %1 {offsets = [5, 0], sizes = [1, 128], strides = [1, 1]} : vector<6x128xf32> to vector<1x128xf32>
    %37 = vector.extract_strided_slice %0 {offsets = [3, 0], sizes = [2, 128], strides = [1, 1]} : vector<6x128xf32> to vector<2x128xf32>
    %38 = vector.extract_strided_slice %1 {offsets = [3, 0], sizes = [2, 128], strides = [1, 1]} : vector<6x128xf32> to vector<2x128xf32>
    %39 = arith.subf %37, %38 : vector<2x128xf32>
    %40 = arith.mulf %39, %39 : vector<2x128xf32>
    %41 = vector.broadcast %36 : vector<1x128xf32> to vector<2x128xf32>
    %42 = arith.mulf %40, %41 : vector<2x128xf32>
    %cst_14 = arith.constant dense<0.000000e+00> : vector<2xf32>
    %43 = vector.multi_reduction <add>, %42, %cst_14 [1] : vector<2x128xf32> to vector<2xf32>
    %44 = vector.shape_cast %43 : vector<2xf32> to vector<2x1xf32>
    %cst_15 = arith.constant dense<0.000000e+00> : vector<1xf32>
    %45 = vector.multi_reduction <add>, %44, %cst_15 [0] : vector<2x1xf32> to vector<1xf32>
    %46 = vector.shape_cast %45 : vector<1xf32> to vector<1x1xf32>
    %cst_16 = arith.constant dense<0.000000e+00> : vector<1xf32>
    %47 = vector.multi_reduction <add>, %36, %cst_16 [1] : vector<1x128xf32> to vector<1xf32>
    %48 = vector.shape_cast %47 : vector<1xf32> to vector<1x1xf32>
    %49 = tpu.iota {dimensions = array<i32: 1>} : vector<1x4xi32>
    %c0_i32 = arith.constant 0 : i32
    %50 = vector.broadcast %c0_i32 : i32 to vector<1x4xi32>
    %51 = arith.cmpi eq, %49, %50 : vector<1x4xi32>
    %cst_17 = arith.constant 0.000000e+00 : f32
    %52 = vector.shape_cast %34 : vector<1x1xf32> to vector<1x1xf32>
    %53 = vector.broadcast %52 : vector<1x1xf32> to vector<1x4xf32>
    %54 = vector.broadcast %cst_17 : f32 to vector<1x4xf32>
    %55 = arith.select %51, %53, %54 : vector<1x4xi1>, vector<1x4xf32>
    %c1_i32 = arith.constant 1 : i32
    %56 = vector.broadcast %c1_i32 : i32 to vector<1x4xi32>
    %57 = arith.cmpi eq, %49, %56 : vector<1x4xi32>
    %cst_18 = arith.constant 0.000000e+00 : f32
    %58 = vector.shape_cast %35 : vector<1x1xf32> to vector<1x1xf32>
    %59 = vector.broadcast %58 : vector<1x1xf32> to vector<1x4xf32>
    %60 = vector.broadcast %cst_18 : f32 to vector<1x4xf32>
    %61 = arith.select %57, %59, %60 : vector<1x4xi1>, vector<1x4xf32>
    %62 = arith.addf %55, %61 : vector<1x4xf32>
    %c2_i32 = arith.constant 2 : i32
    %63 = vector.broadcast %c2_i32 : i32 to vector<1x4xi32>
    %64 = arith.cmpi eq, %49, %63 : vector<1x4xi32>
    %cst_19 = arith.constant 0.000000e+00 : f32
    %65 = vector.shape_cast %46 : vector<1x1xf32> to vector<1x1xf32>
    %66 = vector.broadcast %65 : vector<1x1xf32> to vector<1x4xf32>
    %67 = vector.broadcast %cst_19 : f32 to vector<1x4xf32>
    %68 = arith.select %64, %66, %67 : vector<1x4xi1>, vector<1x4xf32>
    %69 = arith.addf %62, %68 : vector<1x4xf32>
    %c3_i32 = arith.constant 3 : i32
    %70 = vector.broadcast %c3_i32 : i32 to vector<1x4xi32>
    %71 = arith.cmpi eq, %49, %70 : vector<1x4xi32>
    %cst_20 = arith.constant 0.000000e+00 : f32
    %72 = vector.shape_cast %48 : vector<1x1xf32> to vector<1x1xf32>
    %73 = vector.broadcast %72 : vector<1x1xf32> to vector<1x4xf32>
    %74 = vector.broadcast %cst_20 : f32 to vector<1x4xf32>
    %75 = arith.select %71, %73, %74 : vector<1x4xi1>, vector<1x4xf32>
    %76 = arith.addf %69, %75 : vector<1x4xf32>
    %c0_21 = arith.constant 0 : index
    %c0_22 = arith.constant 0 : index
    %c0_23 = arith.constant 0 : index
    %77 = vector.load %arg3[%c0_21, %c0_22, %c0_23] : memref<1x1x4xf32, #tpu.memory_space<vmem>>, vector<1x1x4xf32>
    %78 = vector.shape_cast %77 : vector<1x1x4xf32> to vector<1x4xf32>
    %79 = vector.shape_cast %76 : vector<1x4xf32> to vector<1x1x4xf32>
    tpu.vector_store %arg3[%c0_21, %c0_22, %c0_23], %79 {strides = array<i32>} : memref<1x1x4xf32, #tpu.memory_space<vmem>>, vector<1x1x4xf32>,
    return
  }
  func.func @transform_0(%arg0: i32) -> (i32, i32) {
    %c0_i32 = arith.constant 0 : i32
    %c0_i32_0 = arith.constant 0 : i32
    return %c0_i32, %arg0 : i32, i32
  }
  func.func @transform_1(%arg0: i32) -> (i32, i32) {
    %c0_i32 = arith.constant 0 : i32
    %c0_i32_0 = arith.constant 0 : i32
    return %c0_i32, %arg0 : i32, i32
  }
  func.func @transform_2(%arg0: i32) -> (i32, i32, i32) {
    %c0_i32 = arith.constant 0 : i32
    %c0_i32_0 = arith.constant 0 : i32
    %c0_i32_1 = arith.constant 0 : i32
    return %arg0, %c0_i32, %c0_i32_0 : i32, i32, i32
  }
}

</mosaic_0001>

<bundles_post_ra>
// kernel: rebalanced_red_ball_loss.1
= control target key start
LH: loop header
LB: loop body
LE: loop exit
PB: predicated region body
PF: predicated region fallthrough
CT: control target
= control target key end

     0   :  { %vm60_vm0 = vcmask 1045509   ;;  %v40_v6 = vlaneseq  ;;  %v100_v13 = vmov 0.75   ;;  %vm25_vm2 = vcmask 1045504   ;;  %s126_s0 = inlined_call_operand.vmem [shape: f32[6,128], index: 0, kind: input, shape index: {}]   ;;  %s127_s1 = inlined_call_operand.vmem [shape: f32[6,128], index: 1, kind: input, shape index: {}]   ;;  %s128_s2 = inlined_call_operand.vmem [shape: f32[1,1,4], index: 2, kind: output, shape index: {}]  }
   0x1   :  { %v11_v0 = vld [vmem:[%s126_s0] sm:$0x3f]  ;;  %vm45_vm3 = vcmask 1044483   ;;  %v101_v24 = vmov 0   ;;  %vm52_vm5 = vcmask 1041408   ;;  %vm88_vm9 = vcmask 24576  }
   0x2   :  { %v12_v1 = vld [vmem:[%s127_s1] sm:$0x3f]  ;;  %v14_v2 = vsub.f32 1.0, %v11_v0  ;;  %v41_v7 = vshrl.u32 %v40_v6, 7  ;;  %96 = vset.pattern.permute.xlu1 %v101_v24  ;;  %97 = vset.pattern.permute.xlu0 %v101_v24  ;;  %v65_v25 = vand.u32 127, %v40_v6 }
   0x3   :  { %vm13_vm1 = vcmp.eq.f32.partialorder %v12_v1, 1.0  ;;  %v61_v3 = vsel %vm60_vm0, %v12_v1, 0.0  ;;  %v38_v9 = vsub.f32 %v11_v0, %v12_v1 }
   0x4   :  { %v15_v4 = vsel %vm13_vm1, %v11_v0, %v14_v2  ;;  %62 = vadd.xlane.f32.xlu1 %v61_v3  ;;  %v42_v10 = vsub.s32 5, %v41_v7  ;;  %v21_v14 = vsel %vm13_vm1, 0.25, %v100_v13  ;;  %vm73_vm4 = vcmp.eq.s32.totalorder %v65_v25, 1 }
   0x5   :  { %v16_v5 = vadd.f32 1e-08, %v15_v4  ;;  %v20_v8 = vsub.f32 1.0, %v15_v4  ;;  %v39_v17 = vmul.f32 %v38_v9, %v38_v9  ;;  %vm82_vm6 = vcmp.eq.s32.totalorder %v65_v25, 3 }
   0x6   :  { %v43_v18 = vrot.slane %v12_v1, %v42_v10  ;;  %vm66_vm7 = vcmp.eq.s32.totalorder %v65_v25, 0  ;;  %vm79_vm8 = vcmp.eq.s32.totalorder %v65_v25, 2 }
   0x7   :  { %98 = vlog2.f32 %v16_v5  ;;  %v22_v16 = vmul.f32 %v20_v8, %v20_v8 }
   0x8   :  { %v44_v21 = vmul.f32 %v43_v18, %v39_v17 }
   0xa   :  { %v46_v23 = vsel %vm45_vm3, %v44_v21, 0.0 }
  0x11   :  { %v99_v11 = vpop.eup %98 }
  0x12   :  { %v18_v12 = vmul.f32 0.6931472, %v99_v11 }
  0x14   :  { %v19_v15 = vsub.f32 0.0, %v18_v12 }
  0x16   :  { %v23_v19 = vmul.f32 %v21_v14, %v19_v15 }
  0x18   :  { %v24_v20 = vmul.f32 %v23_v19, %v22_v16 }
  0x1a   :  { %v26_v22 = vsel %vm25_vm2, %v24_v20, 0.0 }
  0x1b   :  { %27 = vadd.xlane.f32.xlu0 %v26_v22 }
  0x1f   :  { %47 = vadd.xlane.f32.xlu0 %v46_v23 }
  0x91   :  { %v63_v41 = vpop.xlane.xlu1 %62 }
  0x92   :  { %v83_v46 = vsel %vm82_vm6, %v63_v41, 0.0 }
  0x93   :  { %v85_v50 = vrot.slane %v83_v46, 5 }
  0xa8   :  { %v28_v26 = vpop.xlane.xlu0 %27 }
  0xa9   :  { %v29_v27 = vmul.f32 4.0, %v28_v26  ;;  %v74_v28 = vsel %vm73_vm4, %v28_v26, 0.0 }
  0xaa   :  { %v76_v44 = vrot.slane %v74_v28, 5 }
  0xab   :  { %v31_v29 = vrot.slane %v29_v27, 1  ;;  %v34_v31 = vrot.slane %v29_v27, 2 }
  0xac   :  { %v48_v34 = vpop.xlane.xlu0 %47 }
  0xad   :  { %v33_v30 = vadd.f32 %v31_v29, %v29_v27  ;;  %v50_v35 = vrot.slane %v48_v34, 3 }
  0xaf   :  { %v36_v32 = vadd.f32 %v34_v31, %v33_v30  ;;  %v53_v36 = vsel %vm52_vm5, %v50_v35, 0.0 }
  0xb0   :  { %v54_v37 = vrot.slane %v53_v36, 4 }
  0xb1   :  { %v37_v33 = vmul.f32 0.33333334, %v36_v32 }
  0xb2   :  { %v55_v38 = vadd.f32 %v54_v37, %v53_v36 }
  0xb3   :  { %69 = vperm.xlu1 %96, %v37_v33  }
  0xb4   :  { %v56_v39 = vrot.slane %v55_v38, 2 }
  0xb6   :  { %v57_v40 = vadd.f32 %v56_v39, %v55_v38 }
  0xb8   :  { %v58_v42 = vrot.slane %v57_v40, 1 }
  0xba   :  { %v59_v43 = vadd.f32 %v58_v42, %v57_v40 }
  0xbc   :  { %v80_v49 = vsel %vm79_vm8, %v59_v43, 0.0 }
 0x132   :  { %v70_v45 = vpop.permute.xlu1 %69 }
 0x133   :  { %v72_v47 = vsel %vm66_vm7, %v70_v45, 0.0 }
 0x134   :  { %v78_v48 = vadd.f32 %v76_v44, %v72_v47 }
 0x136   :  { %v81_v51 = vadd.f32 %v80_v49, %v78_v48 }
 0x138   :  { %v87_v52 = vadd.f32 %v85_v50, %v81_v51 }
 0x13a   :  { %89 = vst.msk [vmem:[%s128_s2] sm:$0x1] %vm88_vm9, %v87_v52 }

</bundles_post_ra>
